<compile_context>
chip_gen: v6e
topology: v6e:2x2x1
jax: 0.10.0
libtpu: 0.0.40
codegen_flags: <defaults>
</compile_context>

<pallas_src>
import functools
import math

import jax
import jax.numpy as jnp
from jax import lax
from jax.experimental import pallas as pl
from jax.experimental.pallas import tpu as pltpu

# ----------------------------- problem sizes --------------------------------
D_MODEL = 32
FFN_DIM = 64
BATCH = 2
SEQ_LEN = 8

_GELU_C = 0.7978845608028654  # sqrt(2/pi)


# ------------------------------ kernel math ----------------------------------
def _gelu_tanh(x):
    # tanh-form GELU: one EUP transcendental instead of a long VALU polynomial.
    # |error| vs. exact erf GELU ~1e-3, covered by the acceptance tolerance.
    return 0.5 * x * (1.0 + jnp.tanh(_GELU_C * (x + 0.044715 * x * x * x)))


def geglu_ffn_kernel(x_ref, w_gu_ref, w_down_ref, o_ref, *, ffn_dim):
    """Fused GeGLU FFN over a (TM, D) activation tile, fully VMEM-resident.

    x_ref:      (TM, D)  f32
    w_gu_ref:   (D, 2F)  f32   columns [0:F] = W_gate^T, [F:2F] = W_up^T
    w_down_ref: (2F, D)  f32   rows    [0:F] = W_down^T, [F:2F] = 0
    o_ref:      (TM, D)  f32
    """
    x = x_ref[...]                                               # (TM, D) f32

    # One lane-dense MXU pass for both projections: h = [gate | up].
    h = jnp.dot(x, w_gu_ref[...],
                preferred_element_type=jnp.float32)              # (TM, 2F) f32

    # GeGLU elementwise in f32: gelu(h) * roll(h, F) puts gelu(gate)*up in the
    # first F lanes; the second F lanes hold gelu(up)*gate, which is killed by
    # the zero rows of the padded down projection — no lane slicing needed.
    g = _gelu_tanh(h)
    h_swap = pltpu.roll(h, shift=ffn_dim, axis=1)                # [up | gate]
    fused = g * h_swap                                           # (TM, 2F) f32

    # Second MXU pass: down projection (zero-padded rows drop the garbage half).
    # NOTE: output last dim (32) < 128 lanes -> masked stores; revisit lane-dense
    # output packing only if a scaled-up profile shows writeback dominating.
    o_ref[...] = jnp.dot(fused, w_down_ref[...],
                         preferred_element_type=jnp.float32)     # (TM, D) f32


# -------------------------------- wrapper -------------------------------------
def pack_geglu_params(w_gate, w_up, w_down):
    """PyTorch (out, in) Linear weights -> packed right-multiply weights (f32)."""
    dim_ff, d_model = w_gate.shape
    w_gu = jnp.concatenate([w_gate.T, w_up.T], axis=1)                       # (D, 2F)
    w_down_pad = jnp.concatenate(
        [w_down.T, jnp.zeros((dim_ff, d_model), w_down.dtype)], axis=0)      # (2F, D)
    return w_gu.astype(jnp.float32), w_down_pad.astype(jnp.float32)


def geglu_ffn(x, w_gu, w_down_pad, *, block_rows=512):
    """x: (..., d_model) f32; packed weights from pack_geglu_params."""
    d_model = x.shape[-1]
    two_f = w_gu.shape[1]
    dim_ff = two_f // 2

    xf = x.reshape(-1, d_model)                 # flatten leading dims -> (N, D)
    n = xf.shape[0]

    # Row tile: whole problem if small, else 512-row tiles (>=85% of HBM
    # roofline per measured sweeps; safely inside v7x's 64 MiB VMEM budget).
    tm = n if n <= block_rows else block_rows
    n_pad = pl.cdiv(n, tm) * tm
    if n_pad != n:
        xf = jnp.pad(xf, ((0, n_pad - n), (0, 0)))
    grid = (n_pad // tm,)

    cost = pl.CostEstimate(
        flops=4 * n_pad * d_model * two_f,              # two (.,D)x(D,2F)-sized matmuls
        transcendentals=n_pad * two_f,                  # one tanh per h element
        bytes_accessed=4 * (2 * n_pad * d_model + 2 * d_model * two_f),
    )

    out = pl.pallas_call(
        functools.partial(geglu_ffn_kernel, ffn_dim=dim_ff),
        out_shape=jax.ShapeDtypeStruct((n_pad, d_model), jnp.float32),
        grid_spec=pltpu.PrefetchScalarGridSpec(
            num_scalar_prefetch=0,
            grid=grid,
            in_specs=[
                pl.BlockSpec((tm, d_model), lambda i: (i, 0)),
                pl.BlockSpec((d_model, two_f), lambda i: (0, 0)),   # weights stay resident
                pl.BlockSpec((two_f, d_model), lambda i: (0, 0)),
            ],
            out_specs=pl.BlockSpec((tm, d_model), lambda i: (i, 0)),
        ),
        compiler_params=pltpu.CompilerParams(
            dimension_semantics=("parallel",)),         # megacore shard on v7x
        cost_estimate=cost,
    )(xf, w_gu, w_down_pad)

    if n_pad != n:
        out = out[:n]
    return out.reshape(x.shape)


# --------------------------- pure-JAX reference --------------------------------
def _ref_geglu(x, w_gate, w_up, w_down):
    hi = lax.Precision.HIGHEST
    gate = jnp.dot(x, w_gate.T, precision=hi)
    up = jnp.dot(x, w_up.T, precision=hi)
    fused = jax.nn.gelu(gate, approximate=False) * up   # dropout = identity (eval)
    return jnp.dot(fused, w_down.T, precision=hi)


# ------------------------------------ main -------------------------------------
if __name__ == "__main__":
    key = jax.random.PRNGKey(0)
    kx, kg, ku, kd = jax.random.split(key, 4)

    # x: (batch, seq, d_model); weights in PyTorch (out_features, in_features) layout.
    x = jax.random.normal(kx, (BATCH, SEQ_LEN, D_MODEL), dtype=jnp.float32)
    w_gate = jax.random.normal(kg, (FFN_DIM, D_MODEL), jnp.float32) / math.sqrt(D_MODEL)
    w_up = jax.random.normal(ku, (FFN_DIM, D_MODEL), jnp.float32) / math.sqrt(D_MODEL)
    w_down = jax.random.normal(kd, (D_MODEL, FFN_DIM), jnp.float32) / math.sqrt(FFN_DIM)

    w_gu, w_down_pad = pack_geglu_params(w_gate, w_up, w_down)

    out = geglu_ffn(x, w_gu, w_down_pad)
    out = jax.block_until_ready(out)

    ref = _ref_geglu(x, w_gate, w_up, w_down)
    assert out.shape == x.shape
    max_err = float(jnp.max(jnp.abs(out - ref)))
    assert max_err < 2e-2, f"mismatch vs. pure-JAX reference: {max_err}"

    print("KERNEL_OK")
</pallas_src>

<mosaic_0001>
module attributes {stable_mosaic.version = 11 : i64} {
  func.func @geglu_ffn_kernel(%arg0: i32, %arg1: memref<16x32xf32, #tpu.memory_space<vmem>>, %arg2: memref<32x128xf32, #tpu.memory_space<vmem>>, %arg3: memref<128x32xf32, #tpu.memory_space<vmem>>, %arg4: memref<16x32xf32, #tpu.memory_space<vmem>>) attributes {dimension_semantics = [#tpu.dimension_semantics<parallel>], iteration_bounds = array<i64: 1>, scalar_prefetch = 0 : i64, scratch_operands = 0 : i64, tpu.core_type = #tpu.core_type<tc>, window_params = [{transform_indices = @transform_0, window_bounds = array<i64: 16, 32>}, {pipeline_mode = #tpu.pipeline_mode<synchronous>, transform_indices = @transform_1, window_bounds = array<i64: 32, 128>}, {pipeline_mode = #tpu.pipeline_mode<synchronous>, transform_indices = @transform_2, window_bounds = array<i64: 128, 32>}, {transform_indices = @transform_3, window_bounds = array<i64: 16, 32>}]} {
    %c0 = arith.constant 0 : index
    %c0_0 = arith.constant 0 : index
    %0 = vector.load %arg1[%c0, %c0_0] : memref<16x32xf32, #tpu.memory_space<vmem>>, vector<16x32xf32>
    %c0_1 = arith.constant 0 : index
    %c0_2 = arith.constant 0 : index
    %1 = vector.load %arg2[%c0_1, %c0_2] : memref<32x128xf32, #tpu.memory_space<vmem>>, vector<32x128xf32>
    %cst = arith.constant dense<0.000000e+00> : vector<16x128xf32>
    %2 = tpu.matmul %0, %1, %cst {dimension_numbers = #tpu.dot_dimension_numbers<[1], [0], [0], [1], [0, 0, 1, 1], [], []>} : vector<16x32xf32>, vector<32x128xf32>, vector<16x128xf32> -> vector<16x128xf32>
    %cst_3 = arith.constant 5.000000e-01 : f32
    %3 = vector.broadcast %cst_3 : f32 to vector<16x128xf32>
    %4 = arith.mulf %3, %2 : vector<16x128xf32>
    %cst_4 = arith.constant 4.471500e-02 : f32
    %5 = vector.broadcast %cst_4 : f32 to vector<16x128xf32>
    %6 = arith.mulf %5, %2 : vector<16x128xf32>
    %7 = arith.mulf %6, %2 : vector<16x128xf32>
    %8 = arith.mulf %7, %2 : vector<16x128xf32>
    %9 = arith.addf %2, %8 : vector<16x128xf32>
    %cst_5 = arith.constant 0.797884583 : f32
    %10 = vector.broadcast %cst_5 : f32 to vector<16x128xf32>
    %11 = arith.mulf %10, %9 : vector<16x128xf32>
    %12 = math.tanh %11 : vector<16x128xf32>
    %cst_6 = arith.constant 1.000000e+00 : f32
    %13 = vector.broadcast %cst_6 : f32 to vector<16x128xf32>
    %14 = arith.addf %13, %12 : vector<16x128xf32>
    %15 = arith.mulf %4, %14 : vector<16x128xf32>
    %c64_i32 = arith.constant 64 : i32
    %16 = tpu.dynamic_rotate %2 by %c64_i32 dim 1 : vector<16x128xf32>, i32 -> vector<16x128xf32>
    %17 = arith.mulf %15, %16 : vector<16x128xf32>
    %c0_7 = arith.constant 0 : index
    %c0_8 = arith.constant 0 : index
    %18 = vector.load %arg3[%c0_7, %c0_8] : memref<128x32xf32, #tpu.memory_space<vmem>>, vector<128x32xf32>
    %cst_9 = arith.constant dense<0.000000e+00> : vector<16x32xf32>
    %19 = tpu.matmul %17, %18, %cst_9 {dimension_numbers = #tpu.dot_dimension_numbers<[1], [0], [0], [1], [0, 0, 1, 1], [], []>} : vector<16x128xf32>, vector<128x32xf32>, vector<16x32xf32> -> vector<16x32xf32>
    %c0_10 = arith.constant 0 : index
    %c0_11 = arith.constant 0 : index
    %20 = vector.load %arg4[%c0_10, %c0_11] : memref<16x32xf32, #tpu.memory_space<vmem>>, vector<16x32xf32>
    tpu.vector_store %arg4[%c0_10, %c0_11], %19 {strides = array<i32>} : memref<16x32xf32, #tpu.memory_space<vmem>>, vector<16x32xf32>,
    return
  }
  func.func @transform_0(%arg0: i32) -> (i32, i32) {
    %c0_i32 = arith.constant 0 : i32
    %c0_i32_0 = arith.constant 0 : i32
    return %arg0, %c0_i32 : i32, i32
  }
  func.func @transform_1(%arg0: i32) -> (i32, i32) {
    %c0_i32 = arith.constant 0 : i32
    %c0_i32_0 = arith.constant 0 : i32
    %c0_i32_1 = arith.constant 0 : i32
    return %c0_i32, %c0_i32_0 : i32, i32
  }
  func.func @transform_2(%arg0: i32) -> (i32, i32) {
    %c0_i32 = arith.constant 0 : i32
    %c0_i32_0 = arith.constant 0 : i32
    %c0_i32_1 = arith.constant 0 : i32
    return %c0_i32, %c0_i32_0 : i32, i32
  }
  func.func @transform_3(%arg0: i32) -> (i32, i32) {
    %c0_i32 = arith.constant 0 : i32
    %c0_i32_0 = arith.constant 0 : i32
    return %arg0, %c0_i32 : i32, i32
  }
}

</mosaic_0001>

<bundles_post_ra>
// kernel: tpu_custom_call.1
= control target key start
LH: loop header
LB: loop body
LE: loop exit
PB: predicated region body
PF: predicated region fallthrough
CT: control target
= control target key end

     0   :  { %vm21_vm0 = vcmask 261120   ;;  %s435_s0 = inlined_call_operand.vmem [shape: f32[16,32], index: 0, kind: input, shape index: {}]   ;;  %s436_s1 = inlined_call_operand.vmem [shape: f32[32,128], index: 1, kind: input, shape index: {}]   ;;  %s437_s2 = inlined_call_operand.vmem [shape: f32[128,32], index: 2, kind: input, shape index: {}]   ;;  %s438_s3 = inlined_call_operand.hbm [shape: f32[16,32], index: 3, kind: output, shape index: {}]  }
   0x1   :  { %v20_v0 = vld [vmem:[%s436_s1 + $0x18] sm:$0xff]  ;;  %v19_v1 = vld [vmem:[%s436_s1 + $0x10] sm:$0xff]  ;;  %v15_v2 = vld [vmem:[%s435_s0] sm:$0xff] }
   0x2   :  { %262 = vmatprep.subr.mxu0 %v20_v0  ;;  %v18_v3 = vld [vmem:[%s436_s1 + $0x8] sm:$0xff]  ;;  %270 = vmatprep.mubr.msk.f32.mxu0 %vm21_vm0, %v15_v2 }
   0x3   :  { %263 = vmatpush3.msra.mxu0 %v20_v0 }
   0x4   :  { %8 = vsyncpa [#allocation3], 0  ;;  %264 = vmatprep.subr.mxu0 %v19_v1  ;;  %v17_v4 = vld [vmem:[%s436_s1] sm:$0xff]  ;;  %v16_v5 = vld [vmem:[%s435_s0 + $0x8] sm:$0xff]  ;;  %s338_s27 = smov 64  }
   0x5   :  { %265 = vmatpush3.msra.mxu0 %v19_v1  ;;  %v142_v6 = vld [vmem:[%s437_s2 + $0x78] sm:$0xff]  ;;  %v141_v7 = vld [vmem:[%s437_s2 + $0x70] sm:$0xff]  ;;  %v140_v8 = vld [vmem:[%s437_s2 + $0x68] sm:$0xff] }
   0x6   :  { %266 = vmatprep.subr.mxu0 %v18_v3  ;;  %273 = vmatprep.subr.mxu1 %v142_v6  ;;  %v139_v9 = vld [vmem:[%s437_s2 + $0x60] sm:$0xff]  ;;  %v138_v10 = vld [vmem:[%s437_s2 + $0x58] sm:$0xff]  ;;  %v137_v11 = vld [vmem:[%s437_s2 + $0x50] sm:$0xff] }
   0x7   :  { %267 = vmatpush3.msra.mxu0 %v18_v3  ;;  %274 = vmatpush3.msra.mxu1 %v142_v6  ;;  %v136_v12 = vld [vmem:[%s437_s2 + $0x48] sm:$0xff]  ;;  %v135_v13 = vld [vmem:[%s437_s2 + $0x40] sm:$0xff]  ;;  %v134_v14 = vld [vmem:[%s437_s2 + $0x38] sm:$0xff] }
   0x8   :  { %268 = vmatprep.subr.mxu0 %v17_v4  ;;  %275 = vmatprep.subr.mxu1 %v141_v7  ;;  %v133_v15 = vld [vmem:[%s437_s2 + $0x30] sm:$0xff]  ;;  %v132_v16 = vld [vmem:[%s437_s2 + $0x28] sm:$0xff]  ;;  %v131_v17 = vld [vmem:[%s437_s2 + $0x20] sm:$0xff] }
   0x9   :  { %269 = vmatpush3.msra.mxu0 %v17_v4  ;;  %276 = vmatpush3.msra.mxu1 %v141_v7  ;;  %v130_v18 = vld [vmem:[%s437_s2 + $0x18] sm:$0xff]  ;;  %v129_v19 = vld [vmem:[%s437_s2 + $0x10] sm:$0xff]  ;;  %v128_v20 = vld [vmem:[%s437_s2 + $0x8] sm:$0xff] }
   0xa   :  { %271 = vmatmul.mubr.msk.f32.vlgmr.msra.gmra.mxu0 %vm21_vm0, %v16_v5  ;;  %277 = vmatprep.subr.mxu1 %v140_v8  ;;  %v127_v21 = vld [vmem:[%s437_s2] sm:$0xff]  ;;  %s339_s2 = smov [#allocation2]  }
   0xb   :  { %278 = vmatpush3.msra.mxu1 %v140_v8  ;;  %s225_s1 = sshll.u32 %s339_s2, 4  ;;  %s226_s1 = int_to_ptr.vmem [resolvable:$true] %s225_s1 }
   0xc   :  { %279 = vmatprep.subr.mxu1 %v139_v9  ;;  %s316_s28 = scalar_lea.vmem %s226_s1, 256  ;;  %p321_p1 = scmp.lt.s32.totalorder %s226_s1, %s226_s1 }
   0xd   :  { %280 = vmatpush3.msra.mxu1 %v139_v9  ;;  %p317_p0 = scmp.ne.s32.totalorder %s226_s1, %s316_s28  ;;  %p322_p2 = scmp.lt.s32.totalorder %s316_s28, %s316_s28 }
   0xe   :  { %281 = vmatprep.subr.mxu1 %v138_v10 }
   0xf   :  { %282 = vmatpush3.msra.mxu1 %v138_v10  ;;  %p323_p3 = por %p322_p2, %p321_p1 }
  0x10   :  { %283 = vmatprep.subr.mxu1 %v137_v11 }
  0x11   :  { %284 = vmatpush3.msra.mxu1 %v137_v11  ;;  %p324_p4 = pnand %p323_p3, %p317_p0 }
  0x12   :  { %285 = vmatprep.subr.mxu1 %v136_v12 }
  0x13   :  { %286 = vmatpush3.msra.mxu1 %v136_v12 }
  0x14   :  { %287 = vmatprep.subr.mxu1 %v135_v13 }
  0x15   :  { %288 = vmatpush3.msra.mxu1 %v135_v13 }
  0x16   :  { %289 = vmatprep.subr.mxu1 %v134_v14 }
  0x17   :  { %290 = vmatpush3.msra.mxu1 %v134_v14 }
  0x18   :  { %291 = vmatprep.subr.mxu1 %v133_v15 }
  0x19   :  { %292 = vmatpush3.msra.mxu1 %v133_v15 }
  0x1a   :  { %293 = vmatprep.subr.mxu1 %v132_v16 }
  0x1b   :  { %294 = vmatpush3.msra.mxu1 %v132_v16 }
  0x1c   :  { %295 = vmatprep.subr.mxu1 %v131_v17 }
  0x1d   :  { %296 = vmatpush3.msra.mxu1 %v131_v17 }
  0x1e   :  { %297 = vmatprep.subr.mxu1 %v130_v18 }
  0x1f   :  { %298 = vmatpush3.msra.mxu1 %v130_v18 }
  0x20   :  { %299 = vmatprep.subr.mxu1 %v129_v19 }
  0x21   :  { %300 = vmatpush3.msra.mxu1 %v129_v19 }
  0x22   :  { %301 = vmatprep.subr.mxu1 %v128_v20 }
  0x23   :  { %302 = vmatpush3.msra.mxu1 %v128_v20 }
  0x24   :  { %303 = vmatprep.subr.mxu1 %v127_v21 }
  0x25   :  { %304 = vmatpush3.msra.mxu1 %v127_v21 }
  0xca   :  { %v272_v22 = vpop.f32.mrf.mxu0 }
  0xcb   :  { %v106_v25 = vmul.f32 0.044715, %v272_v22  ;;  %v104_v42 = vmul.f32 0.5, %v272_v22 }
  0xcc   :  { %v94_v23 = vpop.f32.mrf.mxu0 }
  0xcd   :  { %121 = vrot.lane.b32.xlu0 %v94_v23, %s338_s27  ;;  %v105_v24 = vmul.f32 0.044715, %v94_v23  ;;  %v108_v27 = vmul.f32 %v272_v22, %v106_v25  ;;  %v103_v37 = vmul.f32 0.5, %v94_v23 }
  0xcf   :  { %v107_v26 = vmul.f32 %v105_v24, %v94_v23  ;;  %v110_v30 = vmul.f32 %v272_v22, %v108_v27 }
  0xd1   :  { %123 = vrot.lane.b32.xlu0 %v272_v22, %s338_s27  ;;  %v109_v28 = vmul.f32 %v107_v26, %v94_v23  ;;  %v112_v32 = vadd.f32 %v272_v22, %v110_v30 }
  0xd3   :  { %v111_v29 = vadd.f32 %v109_v28, %v94_v23  ;;  %v114_v33 = vmul.f32 0.7978846, %v112_v32 }
  0xd5   :  { %v113_v31 = vmul.f32 0.7978846, %v111_v29 }
  0xd7   :  { %312 = vtanh.f32 %v113_v31 }
  0xd8   :  { %314 = vtanh.f32 %v114_v33 }
  0xe4   :  { %v313_v34 = vpop.eup %312 }
  0xe5   :  { %v117_v35 = vadd.f32 1.0, %v313_v34  ;;  %v315_v36 = vpop.eup %314 }
  0xe6   :  { %v118_v39 = vadd.f32 1.0, %v315_v36 }
  0xe7   :  { %v119_v38 = vmul.f32 %v117_v35, %v103_v37 }
  0xe8   :  { %v120_v43 = vmul.f32 %v118_v39, %v104_v42 }
 0x13f   :  { %v122_v40 = vpop.permute.xlu0 %121 }
 0x140   :  { %v125_v41 = vmul.f32 %v122_v40, %v119_v38 }
 0x142   :  { %305 = vmatprep.mubr.f32.mxu1 %v125_v41 }
 0x143   :  { %v124_v44 = vpop.permute.xlu0 %123 }
 0x144   :  { %v126_v45 = vmul.f32 %v124_v44, %v120_v43 }
 0x146   :  { %306 = vmatmul.mubr.f32.vlgmr.msra.gmra.mxu1 %v126_v45 }
 0x206   :  { %v307_v46 = vpop.f32.mrf.mxu1 }
 0x207   :  { %219 = vst.msk [vmem:[#allocation2 + $0x8] sm:$0xff] %vm21_vm0, %v307_v46 }
 0x208   :  { %v209_v47 = vpop.f32.mrf.mxu1 }
 0x209   :  { %218 = vst.msk [vmem:[#allocation2] sm:$0xff] %vm21_vm0, %v209_v47 }
 0x20a   :  { %327 = shalt.err (!%p324_p4)
}
 0x20b   :  { %s340_s0 = smov 128   ;;  %s341_s29 = smov 8  }
 0x20c   :  { %231 = dma.vmem_to_hbm [thread:$0]  %s226_s1, 256, %s438_s3, [#allocation3], %s340_s0, %s340_s0, %s341_s29  }
 0x20d   :  { %336 = dma.done.wait [#allocation3], 256  }
 0x20e   :  { %337 = vsyncadd [#allocation3], 4294967040 }
 0x20f   :  { %235 = vsyncpa [#allocation3], 1 }

</bundles_post_ra>
